<compile_context>
chip_gen: v7x
topology: tpu7x:2x2x1
jax: 0.10.0
libtpu: 0.0.40
codegen_flags: <defaults>
</compile_context>

<pallas_src>
import functools

import jax
import jax.numpy as jnp
from jax.experimental import pallas as pl
from jax.experimental.pallas import tpu as pltpu


def _round_up(x, m):
    return (x + m - 1) // m * m


def _pool_partial_kernel(batch_ref, x_ref, psum_ref, pcnt_ref, acc_ref, cnt_ref,
                         *, tile_n, tiles_per_split, num_nodes):
    """Streaming per-graph segment-sum for one node-range split.

    batch_ref : [1, tile_n] int32   graph id per node (ragged tail masked by index)
    x_ref     : [tile_n, H] bf16    node hidden features (streamed, double-buffered)
    psum_ref  : [B_pad, H]  f32     per-split partial feature sums (written at last t)
    pcnt_ref  : [B_pad, 1]  f32     per-split partial node counts (written at last t)
    acc_ref, cnt_ref : VMEM scratch accumulators (persist across the t axis)
    """
    t = pl.program_id(1)

    @pl.when(t == 0)
    def _init():
        acc_ref[...] = jnp.zeros_like(acc_ref)
        cnt_ref[...] = jnp.zeros_like(cnt_ref)

    # Global node offset of this (possibly ragged / clamped-duplicate) tile.
    logical_tile = pl.program_id(0) * tiles_per_split + t
    node_base = logical_tile * tile_n

    b_pad = acc_ref.shape[0]
    seg = batch_ref[...]                                                  # [1, tile_n]
    graph_ids = jax.lax.broadcasted_iota(jnp.int32, (b_pad, tile_n), 0)
    col_idx = jax.lax.broadcasted_iota(jnp.int32, (1, tile_n), 1) + node_base
    col_valid = col_idx < num_nodes                                       # [1, tile_n]
    # One-hot membership mask for the current node tile only.  Graph ids are
    # assumed to lie in [0, num_graphs); ids >= B_pad are silently dropped.
    mask = jnp.logical_and(graph_ids == seg, col_valid)                   # [B_pad, tile_n]
    mask_f32 = mask.astype(jnp.float32)

    # Zero out-of-range rows of x: mask==0 alone would not protect the MXU f32
    # accumulation from NaN/Inf garbage in the OOB portion of a ragged tile.
    row_idx = jax.lax.broadcasted_iota(jnp.int32, (tile_n, 1), 0) + node_base
    x_blk = jnp.where(row_idx < num_nodes, x_ref[...], jnp.zeros((), x_ref.dtype))

    # bf16 x bf16 -> f32 accumulate: native MXU path on all generations.
    acc_ref[...] += jnp.dot(mask_f32.astype(x_blk.dtype), x_blk,
                            preferred_element_type=jnp.float32)           # [B_pad, H]
    # Exact node counts, accumulated in f32 (XLU cross-lane reduce, ~free).
    cnt_ref[...] += jnp.sum(mask_f32, axis=1, keepdims=True)              # [B_pad, 1]

    @pl.when(t == pl.num_programs(1) - 1)
    def _flush():
        psum_ref[...] = acc_ref[...]
        pcnt_ref[...] = cnt_ref[...]


def _combine_readout_kernel(psum_ref, pcnt_ref, w1_ref, b1_ref, w2_ref, b2_ref,
                            out_ref):
    """Combine per-split partials -> mean pool -> Linear -> ReLU -> (Dropout=id) -> Linear."""
    pooled = jnp.sum(psum_ref[...], axis=0)                               # [B_pad, H]
    counts = jnp.sum(pcnt_ref[...], axis=0)                               # [B_pad, 1]
    mean = pooled / jnp.maximum(counts, 1.0)      # exact divide: finalize runs once
    h = jnp.dot(mean, w1_ref[...], preferred_element_type=jnp.float32) + b1_ref[...]
    h = jnp.maximum(h, 0.0)
    out = jnp.dot(h, w2_ref[...], preferred_element_type=jnp.float32) + b2_ref[...]
    out_ref[...] = out.astype(out_ref.dtype)


def base_gnn_pool_readout(x, batch, num_graphs, w1, b1, w2, b2, *,
                          tile_n=1024, num_splits=2):
    """x: [N, H] node hidden features, batch: [N] int graph ids.

    Returns [num_graphs, O] logits = readout(global_mean_pool(x, batch)).
    """
    N, H = x.shape
    O = w2.shape[1]
    B_pad = _round_up(max(int(num_graphs), 1), 8)

    # bf16 streaming of x (halves HBM bytes); f32 accumulation happens in-kernel.
    # TODO(synk): upstream (subclass) GNN layers should emit bf16 node features
    # directly so this cast (one extra elementwise pass over x) disappears.
    x_bf16 = x.astype(jnp.bfloat16)
    batch2d = batch.astype(jnp.int32).reshape(1, N)

    # Tile sizing: lane-aligned (multiple of 128) unless N itself is small, never
    # larger than N (ragged tail masked in-kernel), and budgeted so the streamed
    # buffers fit comfortably inside v7x's 64 MiB physical VMEM.
    if N <= 128:
        tile = N
    else:
        tile = max(128, min(_round_up(tile_n, 128), (N // 128) * 128))

    def vmem_need(tn):
        return (2 * tn * H * 2                       # x blocks, double-buffered, bf16
                + 2 * tn * 4                         # batch-id blocks, double-buffered
                + 2 * (B_pad * H * 4 + B_pad * 128 * 4)   # partial-sum / count outputs
                + B_pad * H * 4 + B_pad * 128 * 4)        # accumulator scratch

    budget = 40 << 20                                # headroom under v7x's 64 MiB
    while tile > 128 and vmem_need(tile) > budget:
        tile = max(128, (tile // 2 // 128) * 128)

    total_tiles = pl.cdiv(N, tile)
    splits = max(1, min(int(num_splits), total_tiles))
    tiles_per_split = pl.cdiv(total_tiles, splits)
    last_tile = total_tiles - 1

    def node_block(c, t):
        # Clamp so duplicated / beyond-the-end tiles re-read the last valid tile;
        # the kernel masks them out by global node index.
        return jnp.minimum(c * tiles_per_split + t, last_tile)

    kernel = functools.partial(_pool_partial_kernel, tile_n=tile,
                               tiles_per_split=tiles_per_split, num_nodes=N)

    vmem_limit = int(min(max(vmem_need(tile) + (8 << 20), 32 << 20), 48 << 20))

    # Stage 1: HBM-streaming segment-sum, split across TensorCores on v7x via the
    # leading "parallel" axis (harmlessly serialized on 1-TC chips).
    psum, pcnt = pl.pallas_call(
        kernel,
        out_shape=(jax.ShapeDtypeStruct((splits, B_pad, H), jnp.float32),
                   jax.ShapeDtypeStruct((splits, B_pad, 1), jnp.float32)),
        grid_spec=pltpu.PrefetchScalarGridSpec(
            num_scalar_prefetch=0,
            grid=(splits, tiles_per_split),
            in_specs=[
                pl.BlockSpec((1, tile), lambda c, t: (0, node_block(c, t))),   # batch ids
                pl.BlockSpec((tile, H), lambda c, t: (node_block(c, t), 0)),   # node feats
            ],
            out_specs=[
                pl.BlockSpec((None, B_pad, H), lambda c, t: (c, 0, 0)),
                pl.BlockSpec((None, B_pad, 1), lambda c, t: (c, 0, 0)),
            ],
            scratch_shapes=[pltpu.VMEM((B_pad, H), jnp.float32),
                            pltpu.VMEM((B_pad, 1), jnp.float32)],
        ),
        compiler_params=pltpu.CompilerParams(
            dimension_semantics=("parallel", "arbitrary"),
            vmem_limit_bytes=vmem_limit,
        ),
    )(batch2d, x_bf16)

    # Stage 2: tiny combine + mean + readout MLP; whole arrays fit in VMEM, so the
    # weights are loaded exactly once (no dead double-buffer in the streaming loop).
    out_pad = pl.pallas_call(
        _combine_readout_kernel,
        out_shape=jax.ShapeDtypeStruct((B_pad, O), jnp.float32),
    )(psum, pcnt,
      w1.astype(jnp.float32), b1.reshape(1, H).astype(jnp.float32),
      w2.astype(jnp.float32), b2.reshape(1, O).astype(jnp.float32))

    return out_pad[:num_graphs, :]


def init_linear(key, fan_in, fan_out):
    """PyTorch nn.Linear default init: U(-1/sqrt(fan_in), 1/sqrt(fan_in))."""
    kw, kb = jax.random.split(key)
    bound = 1.0 / jnp.sqrt(jnp.float32(fan_in))
    # PyTorch stores weight as [out, in]; we keep [in, out] layout for x @ W.
    w = jax.random.uniform(kw, (fan_in, fan_out), jnp.float32, -bound, bound)
    b = jax.random.uniform(kb, (fan_out,), jnp.float32, -bound, bound)
    return w, b


if __name__ == "__main__":
    # Small shapes: 3 graphs, 200 nodes total, hidden_dim=32, output_dim=8.
    # tile_n=128 -> 2 node tiles -> with num_splits=2 both the per-split partials
    # path and the ragged-tail masking (second tile has only 72 valid rows) are
    # exercised.
    hidden_dim = 32
    output_dim = 8
    num_graphs = 3
    nodes_per_graph = (70, 60, 70)
    num_nodes = sum(nodes_per_graph)

    key = jax.random.PRNGKey(0)
    kx, k1, k2 = jax.random.split(key, 3)

    # Node *hidden* features (output of the subclass-defined GNN layers).
    x = jax.random.normal(kx, (num_nodes, hidden_dim), jnp.float32)
    batch = jnp.concatenate([jnp.full((n,), g, jnp.int32)
                             for g, n in enumerate(nodes_per_graph)])

    # readout = Linear(H,H) -> ReLU -> Dropout(identity in eval) -> Linear(H,O)
    w1, b1 = init_linear(k1, hidden_dim, hidden_dim)
    w2, b2 = init_linear(k2, hidden_dim, output_dim)

    out = base_gnn_pool_readout(x, batch, num_graphs, w1, b1, w2, b2,
                                tile_n=128, num_splits=2)
    out = jax.block_until_ready(out)

    # Pure-JAX reference with the same bf16-streaming contract for x.
    x_cast = x.astype(jnp.bfloat16).astype(jnp.float32)
    onehot = (jnp.arange(num_graphs)[:, None] == batch[None, :]).astype(jnp.float32)
    pooled = onehot @ x_cast / jnp.maximum(onehot.sum(1, keepdims=True), 1.0)
    ref = jnp.maximum(pooled @ w1 + b1, 0.0) @ w2 + b2

    assert out.shape == (num_graphs, output_dim)
    assert jnp.allclose(out, ref, atol=2e-3, rtol=2e-3), \
        f"max abs err {float(jnp.max(jnp.abs(out - ref)))}"

    print("KERNEL_OK")
</pallas_src>

<mosaic_0001>
module attributes {stable_mosaic.version = 11 : i64} {
  func.func @_pool_partial_kernel(%arg0: i32, %arg1: i32, %arg2: memref<1x128xi32, #tpu.memory_space<vmem>>, %arg3: memref<128x32xbf16, #tpu.memory_space<vmem>>, %arg4: memref<1x8x32xf32, #tpu.memory_space<vmem>>, %arg5: memref<1x8x1xf32, #tpu.memory_space<vmem>>, %arg6: memref<8x32xf32, #tpu.memory_space<vmem>>, %arg7: memref<8x1xf32, #tpu.memory_space<vmem>>) attributes {dimension_semantics = [#tpu.dimension_semantics<parallel>, #tpu.dimension_semantics<arbitrary>], iteration_bounds = array<i64: 2, 1>, scalar_prefetch = 0 : i64, scratch_operands = 2 : i64, tpu.core_type = #tpu.core_type<tc>, window_params = [{transform_indices = @transform_0, window_bounds = array<i64: 1, 128>}, {transform_indices = @transform_1, window_bounds = array<i64: 128, 32>}, {transform_indices = @transform_2, window_bounds = array<i64: 1, 8, 32>}, {transform_indices = @transform_3, window_bounds = array<i64: 1, 8, 1>}]} {
    %c0_i32 = arith.constant 0 : i32
    %0 = arith.cmpi eq, %arg1, %c0_i32 : i32
    %1 = arith.extui %0 : i1 to i32
    %c0_i32_0 = arith.constant 0 : i32
    %2 = arith.cmpi ne, %1, %c0_i32_0 : i32
    scf.if %2 {
      %cst_17 = arith.constant 0.000000e+00 : f32
      %42 = vector.broadcast %cst_17 : f32 to vector<8x32xf32>
      %c0_18 = arith.constant 0 : index
      %c0_19 = arith.constant 0 : index
      %43 = vector.load %arg6[%c0_18, %c0_19] : memref<8x32xf32, #tpu.memory_space<vmem>>, vector<8x32xf32>
      tpu.vector_store %arg6[%c0_18, %c0_19], %42 {strides = array<i32>} : memref<8x32xf32, #tpu.memory_space<vmem>>, vector<8x32xf32>,
      %cst_20 = arith.constant 0.000000e+00 : f32
      %44 = vector.broadcast %cst_20 : f32 to vector<8x1xf32>
      %c0_21 = arith.constant 0 : index
      %c0_22 = arith.constant 0 : index
      %45 = vector.load %arg7[%c0_21, %c0_22] : memref<8x1xf32, #tpu.memory_space<vmem>>, vector<8x1xf32>
      tpu.vector_store %arg7[%c0_21, %c0_22], %44 {strides = array<i32>} : memref<8x1xf32, #tpu.memory_space<vmem>>, vector<8x1xf32>,
    } else {
    }
    %c1_i32 = arith.constant 1 : i32
    %3 = arith.muli %arg0, %c1_i32 : i32
    %4 = arith.addi %3, %arg1 : i32
    %c128_i32 = arith.constant 128 : i32
    %5 = arith.muli %4, %c128_i32 : i32
    %c0 = arith.constant 0 : index
    %c0_1 = arith.constant 0 : index
    %6 = vector.load %arg2[%c0, %c0_1] : memref<1x128xi32, #tpu.memory_space<vmem>>, vector<1x128xi32>
    %7 = tpu.iota {dimensions = array<i32: 0>} : vector<8x128xi32>
    %8 = tpu.iota {dimensions = array<i32: 1>} : vector<1x128xi32>
    %9 = vector.broadcast %5 : i32 to vector<1x128xi32>
    %10 = arith.addi %8, %9 : vector<1x128xi32>
    %c200_i32 = arith.constant 200 : i32
    %11 = vector.broadcast %c200_i32 : i32 to vector<1x128xi32>
    %12 = arith.cmpi slt, %10, %11 : vector<1x128xi32>
    %13 = vector.broadcast %6 : vector<1x128xi32> to vector<8x128xi32>
    %14 = arith.cmpi eq, %7, %13 : vector<8x128xi32>
    %15 = vector.broadcast %12 : vector<1x128xi1> to vector<8x128xi1>
    %16 = arith.andi %14, %15 : vector<8x128xi1>
    %17 = arith.extui %16 : vector<8x128xi1> to vector<8x128xi32>
    %18 = arith.sitofp %17 : vector<8x128xi32> to vector<8x128xf32>
    %19 = tpu.iota {dimensions = array<i32: 0>} : vector<128x1xi32>
    %20 = vector.broadcast %5 : i32 to vector<128x1xi32>
    %21 = arith.addi %19, %20 : vector<128x1xi32>
    %c200_i32_2 = arith.constant 200 : i32
    %22 = vector.broadcast %c200_i32_2 : i32 to vector<128x1xi32>
    %23 = arith.cmpi slt, %21, %22 : vector<128x1xi32>
    %c0_3 = arith.constant 0 : index
    %c0_4 = arith.constant 0 : index
    %24 = vector.load %arg3[%c0_3, %c0_4] : memref<128x32xbf16, #tpu.memory_space<vmem>>, vector<128x32xbf16>
    %cst = arith.constant 0.000000e+00 : bf16
    %25 = vector.shape_cast %23 : vector<128x1xi1> to vector<128x1xi1>
    %26 = vector.broadcast %25 : vector<128x1xi1> to vector<128x32xi1>
    %27 = vector.broadcast %cst : bf16 to vector<128x32xbf16>
    %28 = arith.select %26, %24, %27 : vector<128x32xi1>, vector<128x32xbf16>
    %c0_5 = arith.constant 0 : index
    %c0_6 = arith.constant 0 : index
    %29 = vector.load %arg6[%c0_5, %c0_6] : memref<8x32xf32, #tpu.memory_space<vmem>>, vector<8x32xf32>
    %30 = arith.truncf %18 : vector<8x128xf32> to vector<8x128xbf16>
    %cst_7 = arith.constant dense<0.000000e+00> : vector<8x32xf32>
    %31 = tpu.matmul %30, %28, %cst_7 {dimension_numbers = #tpu.dot_dimension_numbers<[1], [0], [0], [1], [0, 0, 1, 1], [], []>} : vector<8x128xbf16>, vector<128x32xbf16>, vector<8x32xf32> -> vector<8x32xf32>
    %32 = arith.addf %29, %31 : vector<8x32xf32>
    %c0_8 = arith.constant 0 : index
    %c0_9 = arith.constant 0 : index
    %33 = vector.load %arg6[%c0_8, %c0_9] : memref<8x32xf32, #tpu.memory_space<vmem>>, vector<8x32xf32>
    tpu.vector_store %arg6[%c0_8, %c0_9], %32 {strides = array<i32>} : memref<8x32xf32, #tpu.memory_space<vmem>>, vector<8x32xf32>,
    %c0_10 = arith.constant 0 : index
    %c0_11 = arith.constant 0 : index
    %34 = vector.load %arg7[%c0_10, %c0_11] : memref<8x1xf32, #tpu.memory_space<vmem>>, vector<8x1xf32>
    %cst_12 = arith.constant dense<0.000000e+00> : vector<8xf32>
    %35 = vector.multi_reduction <add>, %18, %cst_12 [1] : vector<8x128xf32> to vector<8xf32>
    %36 = vector.shape_cast %35 : vector<8xf32> to vector<8x1xf32>
    %37 = arith.addf %34, %36 : vector<8x1xf32>
    %c0_13 = arith.constant 0 : index
    %c0_14 = arith.constant 0 : index
    %38 = vector.load %arg7[%c0_13, %c0_14] : memref<8x1xf32, #tpu.memory_space<vmem>>, vector<8x1xf32>
    tpu.vector_store %arg7[%c0_13, %c0_14], %37 {strides = array<i32>} : memref<8x1xf32, #tpu.memory_space<vmem>>, vector<8x1xf32>,
    %c0_i32_15 = arith.constant 0 : i32
    %39 = arith.cmpi eq, %arg1, %c0_i32_15 : i32
    %40 = arith.extui %39 : i1 to i32
    %c0_i32_16 = arith.constant 0 : i32
    %41 = arith.cmpi ne, %40, %c0_i32_16 : i32
    scf.if %41 {
      %c0_17 = arith.constant 0 : index
      %c0_18 = arith.constant 0 : index
      %42 = vector.load %arg6[%c0_17, %c0_18] : memref<8x32xf32, #tpu.memory_space<vmem>>, vector<8x32xf32>
      %c0_19 = arith.constant 0 : index
      %c0_20 = arith.constant 0 : index
      %c0_21 = arith.constant 0 : index
      %43 = vector.load %arg4[%c0_19, %c0_20, %c0_21] : memref<1x8x32xf32, #tpu.memory_space<vmem>>, vector<1x8x32xf32>
      %44 = vector.shape_cast %43 : vector<1x8x32xf32> to vector<8x32xf32>
      %45 = vector.shape_cast %42 : vector<8x32xf32> to vector<1x8x32xf32>
      tpu.vector_store %arg4[%c0_19, %c0_20, %c0_21], %45 {strides = array<i32>} : memref<1x8x32xf32, #tpu.memory_space<vmem>>, vector<1x8x32xf32>,
      %c0_22 = arith.constant 0 : index
      %c0_23 = arith.constant 0 : index
      %46 = vector.load %arg7[%c0_22, %c0_23] : memref<8x1xf32, #tpu.memory_space<vmem>>, vector<8x1xf32>
      %c0_24 = arith.constant 0 : index
      %c0_25 = arith.constant 0 : index
      %c0_26 = arith.constant 0 : index
      %47 = vector.load %arg5[%c0_24, %c0_25, %c0_26] : memref<1x8x1xf32, #tpu.memory_space<vmem>>, vector<1x8x1xf32>
      %48 = vector.shape_cast %47 : vector<1x8x1xf32> to vector<8x1xf32>
      %49 = vector.shape_cast %46 : vector<8x1xf32> to vector<1x8x1xf32>
      tpu.vector_store %arg5[%c0_24, %c0_25, %c0_26], %49 {strides = array<i32>} : memref<1x8x1xf32, #tpu.memory_space<vmem>>, vector<1x8x1xf32>,
    } else {
    }
    return
  }
  func.func @transform_0(%arg0: i32, %arg1: i32) -> (i32, i32) {
    %c1_i32 = arith.constant 1 : i32
    %0 = arith.muli %arg0, %c1_i32 : i32
    %1 = arith.addi %0, %arg1 : i32
    %c1_i32_0 = arith.constant 1 : i32
    %2 = arith.minsi %1, %c1_i32_0 : i32
    %c0_i32 = arith.constant 0 : i32
    %c0_i32_1 = arith.constant 0 : i32
    return %c0_i32, %2 : i32, i32
  }
  func.func @transform_1(%arg0: i32, %arg1: i32) -> (i32, i32) {
    %c1_i32 = arith.constant 1 : i32
    %0 = arith.muli %arg0, %c1_i32 : i32
    %1 = arith.addi %0, %arg1 : i32
    %c1_i32_0 = arith.constant 1 : i32
    %2 = arith.minsi %1, %c1_i32_0 : i32
    %c0_i32 = arith.constant 0 : i32
    %c0_i32_1 = arith.constant 0 : i32
    return %2, %c0_i32 : i32, i32
  }
  func.func @transform_2(%arg0: i32, %arg1: i32) -> (i32, i32, i32) {
    %c0_i32 = arith.constant 0 : i32
    %c0_i32_0 = arith.constant 0 : i32
    %c0_i32_1 = arith.constant 0 : i32
    return %arg0, %c0_i32, %c0_i32_0 : i32, i32, i32
  }
  func.func @transform_3(%arg0: i32, %arg1: i32) -> (i32, i32, i32) {
    %c0_i32 = arith.constant 0 : i32
    %c0_i32_0 = arith.constant 0 : i32
    %c0_i32_1 = arith.constant 0 : i32
    return %arg0, %c0_i32, %c0_i32_0 : i32, i32, i32
  }
}

</mosaic_0001>

<bundles_post_ra>
// kernel: tpu_custom_call.1
= control target key start
LH: loop header
LB: loop body
LE: loop exit
PB: predicated region body
PF: predicated region fallthrough
CT: control target
= control target key end

     0   :  { %9 = vsyncpa [#allocation5], 0  ;;  %s1165_s0 = inlined_call_operand.vmem [shape: s32[1,200], index: 0, kind: input, shape index: {}]   ;;  %s1166_s1 = inlined_call_operand.vmem [shape: bf16[200,32], index: 1, kind: input, shape index: {}]   ;;  %s1167_s2 = inlined_call_operand.hbm [shape: f32[2,8,32], index: 2, kind: output, shape index: {0}]   ;;  %s1168_s3 = inlined_call_operand.vmem [shape: f32[2,8,1], index: 3, kind: output, shape index: {1}]  }
   0x1   :  { %11 = vsyncpa [#allocation5 + $0x1], 0  ;;  %s873_s12 = smov 0   ;;  %s875_s13 = smov 0  }
   0x2   :  { %s877_s14 = smov 0   ;;  %s879_s15 = smov 0  }
   0x3   :  { %s881_s16 = smov 0   ;;  %s883_s17 = smov 0  }
   0x4 LB: > { %s653_s18 = sadd.s32 4294967295, %s847_s17   ;;  %s654_s19 = sadd.s32 4294967294, %s847_s17   ;;  %s847_s17 = sphi %s883_s17, %s17_s17   ;;  %s843_s16 = sphi %s881_s16, %s1201_s16   ;;  %s839_s15 = sphi %s879_s15, %s1200_s15   ;;  %s835_s14 = sphi %s877_s14, %s1199_s14   ;;  %s831_s13 = sphi %s875_s13, %s1198_s13   ;;  %s827_s12 = sphi %s873_s12, %s1197_s12  }
   0x5   : > { %s29_s20 = sadd.s32 1, %s843_s16  ;;  %s100_s21 = sadd.s32 1, %s835_s14 }
   0x6   : > { %p31_p0 = scmp.ge.s32.totalorder %s29_s20, 2  ;;  %p110_p1 = scmp.ne.s32.totalorder %s835_s14, %s831_s13 }
   0x7   : > { %p111_p2 = scmp.eq.s32.totalorder %s653_s18, 1  ;;  %p116_p3 = scmp.ne.s32.totalorder %s831_s13, %s827_s12 }
   0x8   : > { %s1203_s20 = smov (%p31_p0, %s29_s20), 0  ;;  %p117_p5 = scmp.eq.s32.totalorder %s654_s19, 1 }
   0x9   : > { %p913_p4 = por %p111_p2, %p110_p1  ;;  %s97_s23 = ssub.s32 %s843_s16, %s1203_s20 }
   0xa   : > { %p657_p6 = scmp.ge.s32.totalorder %s847_s17, 1  ;;  %p98_p7 = scmp.eq.s32.totalorder %s97_s23, 0 }
   0xb   : > { %p920_p8 = por %p117_p5, %p116_p3  ;;  %p196_p9 = scmp.lt.s32.totalorder %s847_s17, 3 }
   0xc   : > { %s926_s25 = scalar_select %p98_p7, %s835_s14, %s100_s21  }
   0xd   : > { %p197_p10 = pnand %p657_p6, %p196_p9 }
   0xe   : > { %p238_p11 = scmp.lt.s32.totalorder (!%p197_p10), %s839_s15, 1  ;;  %s665_s26 = sshll.u32 (!%p197_p10), %s839_s15, 7  ;;  %v282_v0 = vlaneseq (!%p197_p10)  ;;  %v849_v1 = vmov (!%p197_p10), 0.0   ;;  %vm850_vm0 = vmmov (!%p197_p10), 0   ;;  %vm275_vm1 = vcmask (!%p197_p10), 261120  }
   0xf   : > { %200 = sbr.rel (%p197_p10) target bundleno = 301 (0x12d), region = 28  ;;  %691 = vmatprep.subr.bf16.mxu0 (!%p197_p10), %v849_v1  ;;  %v933_v2 = vstv (!%p197_p10), %s665_s26  ;;  %707 = vmatprep.mubr.msk.bf16.mxu0 (!%p197_p10), %vm850_vm0, %v849_v1  ;;  %276 = vst.msk [vmem:[#allocation2] sm:$0xff] (!%p197_p10), %vm275_vm1, %v849_v1  ;;  %s228_s21 = sand.u32 (!%p197_p10), 1, %s831_s13  }
  0x10   : > { %v941_v3 = vshrl.u32 (!%p197_p10), %v282_v0, 7  ;;  %v285_v22 = vand.u32 (!%p197_p10), 127, %v282_v0  ;;  %s658_s23 = sshll.u32 (!%p197_p10), %s228_s21, 3  ;;  %s1117_s4 = scalar_lea.hbm (!%p197_p10), %s1167_s2, %s665_s26 }
  0x11   : > { %s533_s5 = scalar_lea.sflag (!%p197_p10), [#allocation5], %s228_s21 }
  0x12   : > { %v299_v4 = vadd.s32 (!%p197_p10), 8, %v941_v3  ;;  %v314_v5 = vadd.s32 (!%p197_p10), %v933_v2, %v941_v3  ;;  %v300_v6 = vadd.s32 (!%p197_p10), 16, %v941_v3  ;;  %v301_v7 = vadd.s32 (!%p197_p10), 24, %v941_v3 }
  0x13   : > { %v302_v8 = vadd.s32 (!%p197_p10), 32, %v941_v3  ;;  %v303_v9 = vadd.s32 (!%p197_p10), 40, %v941_v3  ;;  %v304_v10 = vadd.s32 (!%p197_p10), 48, %v941_v3  ;;  %v305_v11 = vadd.s32 (!%p197_p10), 56, %v941_v3 }
  0x14   : > { %v315_v12 = vadd.s32 (!%p197_p10), %v299_v4, %v933_v2  ;;  %vm330_vm2 = vcmp.lt.s32.totalorder (!%p197_p10), %v314_v5, 200  ;;  %v316_v13 = vadd.s32 (!%p197_p10), %v300_v6, %v933_v2  ;;  %v317_v14 = vadd.s32 (!%p197_p10), %v301_v7, %v933_v2 }
  0x15   : > { %v318_v15 = vadd.s32 (!%p197_p10), %v302_v8, %v933_v2  ;;  %v319_v16 = vadd.s32 (!%p197_p10), %v303_v9, %v933_v2  ;;  %v320_v17 = vadd.s32 (!%p197_p10), %v304_v10, %v933_v2  ;;  %vm961_vm4 = vmpackc.low (!%p197_p10), %vm330_vm2, %vm330_vm2  ;;  %v306_v19 = vadd.s32 (!%p197_p10), 64, %v941_v3 }
  0x16   : > { %s939_s27 = scalar_select %p238_p11, %s839_s15, 1  ;;  %vm331_vm3 = vcmp.lt.s32.totalorder %v315_v12, 200  ;;  %vm332_vm5 = vcmp.lt.s32.totalorder %v316_v13, 200  ;;  %vm333_vm7 = vcmp.lt.s32.totalorder %v317_v14, 200  ;;  %v321_v21 = vadd.s32 %v305_v11, %v933_v2 }
  0x17   : > { %vm971_vm6 = vmpackc.low %vm331_vm3, %vm331_vm3  ;;  %vm334_vm9 = vcmp.lt.s32.totalorder %v318_v15, 200  ;;  %vm335_vm10 = vcmp.lt.s32.totalorder %v319_v16, 200  ;;  %vm336_vm11 = vcmp.lt.s32.totalorder %v320_v17, 200  ;;  %v307_v24 = vadd.s32 72, %v941_v3  ;;  %s852_s15 = smov [#allocation4]  }
  0x18   : > { %s662_s28 = sshll.u32 %s939_s27, 4  ;;  %vm981_vm8 = vmpackc.low %vm332_vm5, %vm332_vm5  ;;  %v322_v32 = vadd.s32 %v306_v19, %v933_v2  ;;  %v308_v39 = vadd.s32 80, %v941_v3  ;;  %vm337_vm15 = vcmp.lt.s32.totalorder %v321_v21, 200  ;;  %v309_v41 = vadd.s32 88, %v941_v3  ;;  %s664_s10 = sshll.u32 %s939_s27, 3 }
  0x19   : > { %p254_p12 = scmp.lt.s32.totalorder %s662_s28, 24  ;;  %vm397_vm12 = vmpackc.low %vm333_vm7, %vm333_vm7  ;;  %v323_v38 = vadd.s32 %v307_v24, %v933_v2  ;;  %v287_v47 = vadd.s32 %v933_v2, %v285_v22  ;;  %v310_v52 = vadd.s32 96, %v941_v3  ;;  %v311_v54 = vadd.s32 104, %v941_v3  ;;  %s269_s19 = scalar_lea.vmem %s1168_s3, %s664_s10 }
  0x1a   : > { %s969_s29 = scalar_select %p238_p11, %s939_s27, 1  ;;  %vm1005_vm13 = vmpackc.low %vm334_vm9, %vm334_vm9  ;;  %vm338_vm2 = vcmp.lt.s32.totalorder %v322_v32, 200  ;;  %v324_v51 = vadd.s32 %v308_v39, %v933_v2  ;;  %v325_v53 = vadd.s32 %v309_v41, %v933_v2  ;;  %v312_v63 = vadd.s32 112, %v941_v3 }
  0x1b   : > { %s1205_s28 = smov (!%p254_p12, %s662_s28), 24  ;;  %vm1013_vm14 = vmpackc.low %vm335_vm10, %vm335_vm10  ;;  %v326_v62 = vadd.s32 %v310_v52, %v933_v2  ;;  %v327_v4 = vadd.s32 %v311_v54, %v933_v2  ;;  %v313_v5 = vadd.s32 120, %v941_v3  ;;  %s773_s7 = sshll.u32 %s852_s15, 4  ;;  %s774_s7 = int_to_ptr.vmem [resolvable:$false] %s773_s7 }
  0x1c   : > { %s663_s30 = sshll.u32 %s1205_s28, 2  ;;  %s242_s9 = scalar_lea.vmem %s1165_s0, %s969_s29  ;;  %vm1025_vm0 = vmpackc.low %vm336_vm11, %vm336_vm11  ;;  %vm340_vm9 = vcmp.lt.s32.totalorder %v324_v51, 200  ;;  %vm341_vm11 = vcmp.lt.s32.totalorder %v325_v53, 200  ;;  %v328_v13 = vadd.s32 %v312_v63, %v933_v2 }
  0x1d   : > { %s979_s6 = scalar_lea.vmem %s1166_s1, %s663_s30  ;;  %v666_v43 = vld [vmem:[%s242_s9] ss:$0 sm:$0xff]  ;;  %vm1032_vm3 = vmpackc.low %vm337_vm15, %vm337_vm15  ;;  %vm343_vm15 = vcmp.lt.s32.totalorder %v327_v4, 200  ;;  %v329_v14 = vadd.s32 %v313_v5, %v933_v2  ;;  %s230_s28 = scalar_lea.vmem [#allocation4], %s658_s23 }
  0x1e   : > { %v346_v25 = vld [vmem:[%s979_s6] sm:$0xf]  ;;  %v347_v26 = vld [vmem:[%s979_s6 + $0x4] sm:$0xf]  ;;  %v348_v27 = vld [vmem:[%s979_s6 + $0x8] sm:$0xf]  ;;  %vm293_vm5 = vcmp.eq.s32.totalorder %v941_v3, %v666_v43 }
  0x1f   : > { %v410_v28 = vsel %vm961_vm4, %v346_v25, 0  ;;  %v411_v29 = vsel %vm971_vm6, %v347_v26, 0  ;;  %v349_v30 = vld [vmem:[%s979_s6 + $0xc] sm:$0xf]  ;;  %v412_v31 = vsel %vm981_vm8, %v348_v27, 0  ;;  %vm339_vm4 = vcmp.lt.s32.totalorder %v323_v38, 200  ;;  %vm1041_vm6 = vmpackc.low %vm338_vm2, %vm338_vm2 }
  0x20   : > { %v668_v33 = vcombine.low %v410_v28, %v411_v29  ;;  %v413_v34 = vsel %vm397_vm12, %v349_v30, 0  ;;  %v350_v35 = vld [vmem:[%s979_s6 + $0x10] sm:$0xf]  ;;  %v351_v36 = vld [vmem:[%s979_s6 + $0x14] sm:$0xf]  ;;  %vm1050_vm7 = vmpackc.low %vm339_vm4, %vm339_vm4  ;;  %vm288_vm8 = vcmp.lt.s32.totalorder %v287_v47, 200 }
  0x21   : > { %v669_v42 = vcombine.low %v412_v31, %v413_v34  ;;  %v414_v44 = vsel %vm1005_vm13, %v350_v35, 0  ;;  %v415_v45 = vsel %vm1013_vm14, %v351_v36, 0  ;;  %v352_v48 = vld [vmem:[%s979_s6 + $0x18] sm:$0xf]  ;;  %v353_v49 = vld [vmem:[%s979_s6 + $0x1c] sm:$0xf]  ;;  %vm1058_vm10 = vmand %vm293_vm5, %vm288_vm8 }
  0x22   : > { %692 = vmatpush3.bf16.msra.mxu0 %v668_v33  ;;  %v670_v55 = vcombine.low %v414_v44, %v415_v45  ;;  %v416_v57 = vsel %vm1025_vm0, %v352_v48, 0  ;;  %v417_v58 = vsel %vm1032_vm3, %v353_v49, 0  ;;  %v354_v60 = vld [vmem:[%s979_s6 + $0x20] sm:$0xf]  ;;  %v355_v61 = vld [vmem:[%s979_s6 + $0x24] sm:$0xf]  ;;  %vm1072_vm12 = vmpackc.low %vm340_vm9, %vm340_vm9 }
  0x23   : > { %693 = vmatprep.subr.bf16.mxu0 %v849_v1  ;;  %v667_v6 = vsel %vm1058_vm10, 1.0, %v849_v1  ;;  %v671_v7 = vcombine.low %v416_v57, %v417_v58  ;;  %v418_v8 = vsel %vm1041_vm6, %v354_v60, 0  ;;  %v419_v9 = vsel %vm1050_vm7, %v355_v61, 0  ;;  %v356_v3 = vld [vmem:[%s979_s6 + $0x28] sm:$0xf]  ;;  %vm1078_vm13 = vmpackc.low %vm341_vm11, %vm341_vm11  ;;  %v426_v34 = vld [vmem:[#allocation2] sm:$0xff] }
  0x24   : > { %520 = vadd.xlane.f32.xlu0 %v667_v6  ;;  %v357_v11 = vld [vmem:[%s979_s6 + $0x2c] sm:$0xf]  ;;  %vm342_vm14 = vcmp.lt.s32.totalorder %v326_v62, 200  ;;  %v672_v15 = vcombine.low %v418_v8, %v419_v9  ;;  %v420_v16 = vsel %vm1072_vm12, %v356_v3, 0  ;;  %v358_v19 = vld [vmem:[%s979_s6 + $0x30] sm:$0xf]  ;;  %vm407_vm2 = vmpackc.low %vm343_vm15, %vm343_vm15 }
  0x25   : > { %v421_v17 = vsel %vm1078_vm13, %v357_v11, 0  ;;  %vm1089_vm0 = vmpackc.low %vm342_vm14, %vm342_vm14  ;;  %v359_v20 = vld [vmem:[%s979_s6 + $0x34] sm:$0xf]  ;;  %vm344_vm3 = vcmp.lt.s32.totalorder %v328_v13, 200  ;;  %vm345_vm4 = vcmp.lt.s32.totalorder %v329_v14, 200  ;;  %vm277_vm8 = vcmask 7168  }
  0x26   : > { %694 = vmatpush3.bf16.msra.mxu0 %v669_v42  ;;  %v673_v2 = vcombine.low %v420_v16, %v421_v17  ;;  %v422_v21 = vsel %vm1089_vm0, %v358_v19, 0  ;;  %v423_v22 = vsel %vm407_vm2, %v359_v20, 0  ;;  %vm408_vm5 = vmpackc.low %vm344_vm3, %vm344_vm3  ;;  %v360_v23 = vld [vmem:[%s979_s6 + $0x38] sm:$0xf]  ;;  %v361_v24 = vld [vmem:[%s979_s6 + $0x3c] sm:$0xf] }
  0x27   : > { %695 = vmatprep.subr.bf16.mxu0 %v849_v1  ;;  %vm409_vm6 = vmpackc.low %vm345_vm4, %vm345_vm4  ;;  %v674_v25 = vcombine.low %v422_v21, %v423_v22  ;;  %v424_v26 = vsel %vm408_vm5, %v360_v23, 0  ;;  %v851_v29 = vmov 1.0|1.0   ;;  %278 = vst.msk [vmem:[#allocation3] sm:$0xff] %vm277_vm8, %v849_v1  ;;  %s550_s29 = sshll.u32 %s230_s28, 4  ;;  %s775_s8 = scalar_lea.vmem %s774_s7, 256  ;;  %s1119_s29 = int_to_ptr.vmem [resolvable:$true] %s550_s29 }
  0x28   : > { %v425_v27 = vsel %vm409_vm6, %v361_v24, 0  ;;  %vm676_vm7 = vmpackc.low %vm1058_vm10, %vm1058_vm10  ;;  %s769_s6 = scalar_lea.vmem %s1119_s29, 128  ;;  %p776_p2 = scmp.lt.s32.totalorder %s1119_s29, %s774_s7 }
  0x29   : > { %v675_v28 = vcombine.low %v424_v26, %v425_v27  ;;  %p770_p13 = scmp.ne.s32.totalorder %s1119_s29, %s769_s6  ;;  %p777_p3 = scmp.lt.s32.totalorder %s775_s8, %s769_s6 }
  0x2a   : > { %696 = vmatpush3.bf16.msra.mxu0 %v670_v55 }
  0x2b   : > { %697 = vmatprep.subr.bf16.mxu0 %v849_v1  ;;  %p771_p0 = pnand %p770_p13, %p913_p4  ;;  %p778_p5 = por %p777_p3, %p776_p2 }
  0x2d   : > { %p772_p1 = pneg %p771_p0 }
  0x2e   : > { %698 = vmatpush3.bf16.msra.mxu0 %v671_v7  ;;  %v519_v30 = vld [vmem:[#allocation3] sm:$0xff] }
  0x2f   : > { %699 = vmatprep.subr.bf16.mxu0 %v849_v1  ;;  %p779_p6 = pnand %p778_p5, %p772_p1 }
  0x32   : > { %700 = vmatpush3.bf16.msra.mxu0 %v672_v15 }
  0x33   : > { %701 = vmatprep.subr.bf16.mxu0 %v849_v1 }
  0x36   : > { %702 = vmatpush3.bf16.msra.mxu0 %v673_v2 }
  0x37   : > { %703 = vmatprep.subr.bf16.mxu0 %v849_v1 }
  0x3a   : > { %704 = vmatpush3.bf16.msra.mxu0 %v674_v25 }
  0x3b   : > { %705 = vmatprep.subr.bf16.mxu0 %v849_v1 }
  0x3e   : > { %706 = vmatpush3.bf16.msra.mxu0 %v675_v28 }
  0x41   : > { %708 = vmatmul.mubr.msk.bf16.vlgmr.msra.gmra.mrb[0].mxu0 %vm676_vm7, %v851_v29 }
  0xb1   : > { %v521_v31 = vpop.xlane.xlu0 %520 }
  0xb2   : > { %v522_v32 = vadd.f32 %v521_v31, %v519_v30 }
  0xb4   : > { %524 = vst.msk [vmem:[#allocation3] sm:$0xff] %vm277_vm8, %v522_v32 }
  0xbb   : > { %v530_v33 = vld [vmem:[#allocation3] sm:$0xff] }
  0xbc   : > { %531 = vst.msk [vmem:[%s269_s19] sm:$0xff] %vm277_vm8, %v530_v33 }
 0x114   : > { %v510_v35 = vpop.f32.mrb[0].mxu0 }
 0x115   : > { %v516_v36 = vadd.f32 %v510_v35, %v426_v34  ;;  %v709_v37 = vpop.f32.mrb[1].mxu0 }
 0x116   : > { %v513_v1 = vpop.f32.mrb[2].mxu0 }
 0x117   : > { %518 = vst.msk [vmem:[#allocation2] sm:$0xff] %vm275_vm1, %v516_v36  ;;  %v710_v38 = vpop.f32.mrb[3].mxu0 }
 0x11e   : > { %v528_v39 = vld [vmem:[#allocation2] sm:$0xff] }
 0x11f   : > { %529 = vst.msk [vmem:[%s230_s28] sm:$0xff] %vm275_vm1, %v528_v39 }
 0x120   : > { %782 = shalt.err (!%p779_p6)
}
 0x121   : > { %s783_s26 = scalar_lea.hbm %s1117_s4, 128  ;;  %s787_s11 = scalar_lea.hbm %s1167_s2, 256 }
 0x122   : > { %p784_p7 = scmp.ne.s32.totalorder %s1117_s4, %s783_s26  ;;  %p788_p11 = scmp.lt.u32.totalorder %s1117_s4, %s1167_s2 }
 0x123   : > { %p789_p12 = scmp.lt.u32.totalorder %s787_s11, %s783_s26  ;;  %p791_p0 = scmp.lt.u32.totalorder %s783_s26, %s1117_s4 }
 0x124   : > { %p785_p9 = pnand %p784_p7, %p913_p4 }
 0x125   : > { %p790_p13 = por %p789_p12, %p788_p11 }
 0x126   : > { %p786_p10 = pneg %p785_p9 }
 0x127   : > { %p792_p1 = por %p791_p0, %p790_p13 }
 0x129   : > { %p793_p2 = pnand %p792_p1, %p786_p10 }
 0x12b   : > { %796 = shalt.err (!%p793_p2)
}
 0x12c   : > { %711 = dma.vmem_to_hbm [thread:$0]  (%p913_p4), %s1119_s29, 128, %s1117_s4, %s533_s5  }
 0x12d PF: > { %p717_p3 = scmp.ge.s32.totalorder %s847_s17, 2  ;;  %s565_s21 = sand.u32 1, %s827_s12  }
 0x12e   : > { %s566_s23 = scalar_lea.sflag [#allocation5], %s565_s21 }
 0x12f   : > { %p714_p5 = pnand %p717_p3, %p920_p8 }
 0x131   : > { %822 = dma.done.wait (!%p714_p5), %s566_s23, 128  }
 0x132   : > { %824 = vsyncadd (!%p714_p5), %s566_s23, 4294967168  ;;  %s17_s17 = sadd.s32 1, %s847_s17   ;;  %s1197_s12 = smov %s831_s13 }
 0x133   : > { %p14_p6 = scmp.ge.s32.totalorder %s17_s17, 4   ;;  %s1198_s13 = smov %s835_s14 }
 0x134   : > { %s1199_s14 = smov %s926_s25  ;;  %s1200_s15 = smov %s843_s16 }
 0x135   : > { %s1201_s16 = smov %s1203_s20  ;;  %16 = sbr.rel (!%p14_p6) target bundleno = 4 (0x4), region = 86 }
 0x13c   :  { %578 = vsyncpa [#allocation5], 1 }
 0x13d   :  { %580 = vsyncpa [#allocation5 + $0x1], 1 }

</bundles_post_ra>
